<compile_context>
chip_gen: v6e
topology: v6e:2x2x1
jax: 0.10.0
libtpu: 0.0.40
codegen_flags: <defaults>
</compile_context>

<pallas_src>
import functools

import jax
import jax.numpy as jnp
from jax.experimental import pallas as pl
from jax.experimental.pallas import tpu as pltpu


# Layer topology of AEMLP (in_features, out_features), encoder then decoder.
def _layer_dims(input_size):
    return [
        (input_size, 64), (64, 64), (64, 32), (32, 16), (16, 8),      # encoder
        (8, 16), (16, 32), (32, 64), (64, 64), (64, input_size),      # decoder
    ]


# Layers with NO activation after them in the ORIGINAL module: last encoder
# layer (idx 4) and last decoder layer (idx 9).  After the wrapper fuses layers
# 4 and 5, only the final fused layer is activation-free.
_NO_ACT_LAYERS = (4, 9)


def _act(h, activation):
    if activation == "relu":
        return jnp.maximum(h, 0.0)
    elif activation == "tanh":
        return jnp.tanh(h)
    raise ValueError(f"unsupported activation: {activation}")


def aemlp_kernel(x_ref, *rest, activation):
    """Feature-major kernel: rest = (w0_T, b0_T, ..., w8_T, b8_T, o_ref).

    x_ref: (in_dim, tile_b)   -- batch on the lane axis
    w_T  : (out, in)          -- VMEM-resident across grid steps
    b_T  : (out, 1)           -- broadcast over lanes
    After fusion, only the last layer has no activation.
    """
    o_ref = rest[-1]
    wb_refs = rest[:-1]
    n_layers = len(wb_refs) // 2

    h = x_ref[...].astype(jnp.float32)                       # (in_dim, tile_b)
    for li in range(n_layers):
        w_t = wb_refs[2 * li][...]                           # (out, in)
        b_t = wb_refs[2 * li + 1][...]                       # (out, 1), f32
        h = jnp.dot(w_t, h.astype(w_t.dtype),
                    preferred_element_type=jnp.float32) + b_t
        if li != n_layers - 1:
            h = _act(h, activation)
    o_ref[...] = h.astype(o_ref.dtype)


def aemlp_forward(x, params, *, activation="relu", tile_b=512,
                  matmul_dtype=jnp.float32):
    """x: (batch, input_size); params: list of (w, b), w (in, out), b (1, out)."""
    if activation not in ("relu", "tanh"):
        raise ValueError(f"unsupported activation: {activation}")
    batch, in_dim = x.shape
    out_dim = params[-1][0].shape[1]
    assert out_dim == in_dim, "AEMLP output size equals input size"

    # --- Fuse encoder-last (no activation) with decoder-first: 16->16 linear.
    w4, b4 = params[4]
    w5, b5 = params[5]
    fused = list(params[:4]) + [(w4 @ w5, b4 @ w5 + b5)] + list(params[6:])

    # --- Batch-on-lanes layout: transpose activations so batch is the lane dim.
    x_t = jnp.asarray(x, jnp.float32).T                      # (in_dim, batch)

    # Lane tile must be a multiple of 128; keep >= 2 grid steps when the batch
    # allows so v7x's two TensorCores both get work; don't over-pad tiny batches.
    batch128 = pl.cdiv(batch, 128) * 128
    tile_b = max(128, (int(tile_b) // 128) * 128)
    tile_b = min(tile_b, batch128)
    if batch128 >= 256 and tile_b > batch128 // 2:
        tile_b = max(128, ((batch128 // 2) // 128) * 128)
    padded_batch = pl.cdiv(batch, tile_b) * tile_b
    if padded_batch != batch:
        x_t = jnp.pad(x_t, ((0, 0), (0, padded_batch - batch)))
    grid = (padded_batch // tile_b,)

    # Input / output tiles move with the grid; parameters stay resident in VMEM.
    in_specs = [pl.BlockSpec((in_dim, tile_b), lambda i: (0, i))]
    flat_params = []
    for w, b in fused:
        wt = jnp.asarray(w, jnp.float32).T.astype(matmul_dtype)   # (out, in)
        bt = jnp.asarray(b, jnp.float32).reshape(-1, 1)           # (out, 1)
        flat_params.extend([wt, bt])
        in_specs.append(pl.BlockSpec(wt.shape, lambda i: (0, 0)))
        in_specs.append(pl.BlockSpec(bt.shape, lambda i: (0, 0)))
    out_spec = pl.BlockSpec((out_dim, tile_b), lambda i: (0, i))

    # Advisory cost estimate for XLA scheduling.
    flops = 0
    transcendentals = 0
    bytes_accessed = padded_batch * (in_dim + out_dim) * 4
    wbytes = jnp.dtype(matmul_dtype).itemsize
    for li, (w, b) in enumerate(fused):
        fi, fo = w.shape
        flops += 2 * padded_batch * fi * fo
        bytes_accessed += w.size * wbytes + b.size * 4
        if li != len(fused) - 1 and activation == "tanh":
            transcendentals += padded_batch * fo

    out_t = pl.pallas_call(
        functools.partial(aemlp_kernel, activation=activation),
        out_shape=jax.ShapeDtypeStruct((out_dim, padded_batch), jnp.float32),
        grid=grid,
        in_specs=in_specs,
        out_specs=out_spec,
        compiler_params=pltpu.CompilerParams(
            dimension_semantics=("parallel",)),
        cost_estimate=pl.CostEstimate(
            flops=flops,
            transcendentals=transcendentals,
            bytes_accessed=bytes_accessed),
    )(x_t, *flat_params)

    # (out_dim, padded_batch) -> (batch, out_dim); padded lanes sliced off.
    return out_t[:, :batch].T


def init_params(key, input_size):
    """PyTorch-default-style uniform init; weights stored (in, out)."""
    dims = _layer_dims(input_size)
    keys = jax.random.split(key, len(dims))
    params = []
    for k, (fi, fo) in zip(keys, dims):
        bound = 1.0 / float(fi) ** 0.5
        kw, kb = jax.random.split(k)
        w = jax.random.uniform(kw, (fi, fo), jnp.float32, -bound, bound)
        b = jax.random.uniform(kb, (1, fo), jnp.float32, -bound, bound)
        params.append((w, b))
    return params


def aemlp_reference(x, params, *, activation="relu"):
    """Pure-JAX reference mirroring the PyTorch module (unfused, 10 layers)."""
    h = x.astype(jnp.float32)
    for li, (w, b) in enumerate(params):
        h = h @ w + b
        if li not in _NO_ACT_LAYERS:
            h = _act(h, activation)
    return h


if __name__ == "__main__":
    input_size = 24      # mlp_config.input_size (== output_size)
    batch = 16           # small test batch; production batches use tile_b 256-2048

    key = jax.random.PRNGKey(0)
    k_param, k_x = jax.random.split(key)

    params = init_params(k_param, input_size)
    x = jax.random.normal(k_x, (batch, input_size), jnp.float32)

    # f32 path (default) — matches the PyTorch-equivalent reference to 1e-4.
    out = aemlp_forward(x, params, activation="relu")
    out = jax.block_until_ready(out)
    ref = aemlp_reference(x, params, activation="relu")
    assert out.shape == (batch, input_size)
    assert jnp.all(jnp.isfinite(out))
    assert jnp.allclose(out, ref, atol=1e-4, rtol=1e-4)

    # tanh path for coverage.
    out_t = jax.block_until_ready(aemlp_forward(x, params, activation="tanh"))
    ref_t = aemlp_reference(x, params, activation="tanh")
    assert jnp.allclose(out_t, ref_t, atol=1e-4, rtol=1e-4)

    # bf16 matmul operands (v6e/v7x native MXU dtype) — looser tolerance.
    out_b = jax.block_until_ready(
        aemlp_forward(x, params, activation="relu", matmul_dtype=jnp.bfloat16))
    assert jnp.all(jnp.isfinite(out_b))
    assert jnp.allclose(out_b, ref, atol=2e-1, rtol=1e-1)

    print("KERNEL_OK")
</pallas_src>

<mosaic_0001>
module attributes {stable_mosaic.version = 11 : i64} {
  func.func @aemlp_kernel(%arg0: i32, %arg1: memref<24x128xf32, #tpu.memory_space<vmem>>, %arg2: memref<64x24xf32, #tpu.memory_space<vmem>>, %arg3: memref<64x1xf32, #tpu.memory_space<vmem>>, %arg4: memref<64x64xf32, #tpu.memory_space<vmem>>, %arg5: memref<64x1xf32, #tpu.memory_space<vmem>>, %arg6: memref<32x64xf32, #tpu.memory_space<vmem>>, %arg7: memref<32x1xf32, #tpu.memory_space<vmem>>, %arg8: memref<16x32xf32, #tpu.memory_space<vmem>>, %arg9: memref<16x1xf32, #tpu.memory_space<vmem>>, %arg10: memref<16x16xf32, #tpu.memory_space<vmem>>, %arg11: memref<16x1xf32, #tpu.memory_space<vmem>>, %arg12: memref<32x16xf32, #tpu.memory_space<vmem>>, %arg13: memref<32x1xf32, #tpu.memory_space<vmem>>, %arg14: memref<64x32xf32, #tpu.memory_space<vmem>>, %arg15: memref<64x1xf32, #tpu.memory_space<vmem>>, %arg16: memref<64x64xf32, #tpu.memory_space<vmem>>, %arg17: memref<64x1xf32, #tpu.memory_space<vmem>>, %arg18: memref<24x64xf32, #tpu.memory_space<vmem>>, %arg19: memref<24x1xf32, #tpu.memory_space<vmem>>, %arg20: memref<24x128xf32, #tpu.memory_space<vmem>>) attributes {dimension_semantics = [#tpu.dimension_semantics<parallel>], iteration_bounds = array<i64: 1>, scalar_prefetch = 0 : i64, scratch_operands = 0 : i64, tpu.core_type = #tpu.core_type<tc>, window_params = [{transform_indices = @transform_0, window_bounds = array<i64: 24, 128>}, {pipeline_mode = #tpu.pipeline_mode<synchronous>, transform_indices = @transform_1, window_bounds = array<i64: 64, 24>}, {pipeline_mode = #tpu.pipeline_mode<synchronous>, transform_indices = @transform_2, window_bounds = array<i64: 64, 1>}, {pipeline_mode = #tpu.pipeline_mode<synchronous>, transform_indices = @transform_3, window_bounds = array<i64: 64, 64>}, {pipeline_mode = #tpu.pipeline_mode<synchronous>, transform_indices = @transform_4, window_bounds = array<i64: 64, 1>}, {pipeline_mode = #tpu.pipeline_mode<synchronous>, transform_indices = @transform_5, window_bounds = array<i64: 32, 64>}, {pipeline_mode = #tpu.pipeline_mode<synchronous>, transform_indices = @transform_6, window_bounds = array<i64: 32, 1>}, {pipeline_mode = #tpu.pipeline_mode<synchronous>, transform_indices = @transform_7, window_bounds = array<i64: 16, 32>}, {pipeline_mode = #tpu.pipeline_mode<synchronous>, transform_indices = @transform_8, window_bounds = array<i64: 16, 1>}, {pipeline_mode = #tpu.pipeline_mode<synchronous>, transform_indices = @transform_9, window_bounds = array<i64: 16, 16>}, {pipeline_mode = #tpu.pipeline_mode<synchronous>, transform_indices = @transform_10, window_bounds = array<i64: 16, 1>}, {pipeline_mode = #tpu.pipeline_mode<synchronous>, transform_indices = @transform_11, window_bounds = array<i64: 32, 16>}, {pipeline_mode = #tpu.pipeline_mode<synchronous>, transform_indices = @transform_12, window_bounds = array<i64: 32, 1>}, {pipeline_mode = #tpu.pipeline_mode<synchronous>, transform_indices = @transform_13, window_bounds = array<i64: 64, 32>}, {pipeline_mode = #tpu.pipeline_mode<synchronous>, transform_indices = @transform_14, window_bounds = array<i64: 64, 1>}, {pipeline_mode = #tpu.pipeline_mode<synchronous>, transform_indices = @transform_15, window_bounds = array<i64: 64, 64>}, {pipeline_mode = #tpu.pipeline_mode<synchronous>, transform_indices = @transform_16, window_bounds = array<i64: 64, 1>}, {pipeline_mode = #tpu.pipeline_mode<synchronous>, transform_indices = @transform_17, window_bounds = array<i64: 24, 64>}, {pipeline_mode = #tpu.pipeline_mode<synchronous>, transform_indices = @transform_18, window_bounds = array<i64: 24, 1>}, {transform_indices = @transform_19, window_bounds = array<i64: 24, 128>}]} {
    %c0 = arith.constant 0 : index
    %c0_0 = arith.constant 0 : index
    %0 = vector.load %arg1[%c0, %c0_0] : memref<24x128xf32, #tpu.memory_space<vmem>>, vector<24x128xf32>
    %c0_1 = arith.constant 0 : index
    %c0_2 = arith.constant 0 : index
    %1 = vector.load %arg2[%c0_1, %c0_2] : memref<64x24xf32, #tpu.memory_space<vmem>>, vector<64x24xf32>
    %c0_3 = arith.constant 0 : index
    %c0_4 = arith.constant 0 : index
    %2 = vector.load %arg3[%c0_3, %c0_4] : memref<64x1xf32, #tpu.memory_space<vmem>>, vector<64x1xf32>
    %cst = arith.constant dense<0.000000e+00> : vector<64x128xf32>
    %3 = tpu.matmul %1, %0, %cst {dimension_numbers = #tpu.dot_dimension_numbers<[1], [0], [0], [1], [0, 0, 1, 1], [], []>} : vector<64x24xf32>, vector<24x128xf32>, vector<64x128xf32> -> vector<64x128xf32>
    %4 = vector.broadcast %2 : vector<64x1xf32> to vector<64x128xf32>
    %5 = arith.addf %3, %4 : vector<64x128xf32>
    %cst_5 = arith.constant 0.000000e+00 : f32
    %6 = vector.broadcast %cst_5 : f32 to vector<64x128xf32>
    %7 = arith.maximumf %5, %6 : vector<64x128xf32>
    %c0_6 = arith.constant 0 : index
    %c0_7 = arith.constant 0 : index
    %8 = vector.load %arg4[%c0_6, %c0_7] : memref<64x64xf32, #tpu.memory_space<vmem>>, vector<64x64xf32>
    %c0_8 = arith.constant 0 : index
    %c0_9 = arith.constant 0 : index
    %9 = vector.load %arg5[%c0_8, %c0_9] : memref<64x1xf32, #tpu.memory_space<vmem>>, vector<64x1xf32>
    %cst_10 = arith.constant dense<0.000000e+00> : vector<64x128xf32>
    %10 = tpu.matmul %8, %7, %cst_10 {dimension_numbers = #tpu.dot_dimension_numbers<[1], [0], [0], [1], [0, 0, 1, 1], [], []>} : vector<64x64xf32>, vector<64x128xf32>, vector<64x128xf32> -> vector<64x128xf32>
    %11 = vector.broadcast %9 : vector<64x1xf32> to vector<64x128xf32>
    %12 = arith.addf %10, %11 : vector<64x128xf32>
    %cst_11 = arith.constant 0.000000e+00 : f32
    %13 = vector.broadcast %cst_11 : f32 to vector<64x128xf32>
    %14 = arith.maximumf %12, %13 : vector<64x128xf32>
    %c0_12 = arith.constant 0 : index
    %c0_13 = arith.constant 0 : index
    %15 = vector.load %arg6[%c0_12, %c0_13] : memref<32x64xf32, #tpu.memory_space<vmem>>, vector<32x64xf32>
    %c0_14 = arith.constant 0 : index
    %c0_15 = arith.constant 0 : index
    %16 = vector.load %arg7[%c0_14, %c0_15] : memref<32x1xf32, #tpu.memory_space<vmem>>, vector<32x1xf32>
    %cst_16 = arith.constant dense<0.000000e+00> : vector<32x128xf32>
    %17 = tpu.matmul %15, %14, %cst_16 {dimension_numbers = #tpu.dot_dimension_numbers<[1], [0], [0], [1], [0, 0, 1, 1], [], []>} : vector<32x64xf32>, vector<64x128xf32>, vector<32x128xf32> -> vector<32x128xf32>
    %18 = vector.broadcast %16 : vector<32x1xf32> to vector<32x128xf32>
    %19 = arith.addf %17, %18 : vector<32x128xf32>
    %cst_17 = arith.constant 0.000000e+00 : f32
    %20 = vector.broadcast %cst_17 : f32 to vector<32x128xf32>
    %21 = arith.maximumf %19, %20 : vector<32x128xf32>
    %c0_18 = arith.constant 0 : index
    %c0_19 = arith.constant 0 : index
    %22 = vector.load %arg8[%c0_18, %c0_19] : memref<16x32xf32, #tpu.memory_space<vmem>>, vector<16x32xf32>
    %c0_20 = arith.constant 0 : index
    %c0_21 = arith.constant 0 : index
    %23 = vector.load %arg9[%c0_20, %c0_21] : memref<16x1xf32, #tpu.memory_space<vmem>>, vector<16x1xf32>
    %cst_22 = arith.constant dense<0.000000e+00> : vector<16x128xf32>
    %24 = tpu.matmul %22, %21, %cst_22 {dimension_numbers = #tpu.dot_dimension_numbers<[1], [0], [0], [1], [0, 0, 1, 1], [], []>} : vector<16x32xf32>, vector<32x128xf32>, vector<16x128xf32> -> vector<16x128xf32>
    %25 = vector.broadcast %23 : vector<16x1xf32> to vector<16x128xf32>
    %26 = arith.addf %24, %25 : vector<16x128xf32>
    %cst_23 = arith.constant 0.000000e+00 : f32
    %27 = vector.broadcast %cst_23 : f32 to vector<16x128xf32>
    %28 = arith.maximumf %26, %27 : vector<16x128xf32>
    %c0_24 = arith.constant 0 : index
    %c0_25 = arith.constant 0 : index
    %29 = vector.load %arg10[%c0_24, %c0_25] : memref<16x16xf32, #tpu.memory_space<vmem>>, vector<16x16xf32>
    %c0_26 = arith.constant 0 : index
    %c0_27 = arith.constant 0 : index
    %30 = vector.load %arg11[%c0_26, %c0_27] : memref<16x1xf32, #tpu.memory_space<vmem>>, vector<16x1xf32>
    %cst_28 = arith.constant dense<0.000000e+00> : vector<16x128xf32>
    %31 = tpu.matmul %29, %28, %cst_28 {dimension_numbers = #tpu.dot_dimension_numbers<[1], [0], [0], [1], [0, 0, 1, 1], [], []>} : vector<16x16xf32>, vector<16x128xf32>, vector<16x128xf32> -> vector<16x128xf32>
    %32 = vector.broadcast %30 : vector<16x1xf32> to vector<16x128xf32>
    %33 = arith.addf %31, %32 : vector<16x128xf32>
    %cst_29 = arith.constant 0.000000e+00 : f32
    %34 = vector.broadcast %cst_29 : f32 to vector<16x128xf32>
    %35 = arith.maximumf %33, %34 : vector<16x128xf32>
    %c0_30 = arith.constant 0 : index
    %c0_31 = arith.constant 0 : index
    %36 = vector.load %arg12[%c0_30, %c0_31] : memref<32x16xf32, #tpu.memory_space<vmem>>, vector<32x16xf32>
    %c0_32 = arith.constant 0 : index
    %c0_33 = arith.constant 0 : index
    %37 = vector.load %arg13[%c0_32, %c0_33] : memref<32x1xf32, #tpu.memory_space<vmem>>, vector<32x1xf32>
    %cst_34 = arith.constant dense<0.000000e+00> : vector<32x128xf32>
    %38 = tpu.matmul %36, %35, %cst_34 {dimension_numbers = #tpu.dot_dimension_numbers<[1], [0], [0], [1], [0, 0, 1, 1], [], []>} : vector<32x16xf32>, vector<16x128xf32>, vector<32x128xf32> -> vector<32x128xf32>
    %39 = vector.broadcast %37 : vector<32x1xf32> to vector<32x128xf32>
    %40 = arith.addf %38, %39 : vector<32x128xf32>
    %cst_35 = arith.constant 0.000000e+00 : f32
    %41 = vector.broadcast %cst_35 : f32 to vector<32x128xf32>
    %42 = arith.maximumf %40, %41 : vector<32x128xf32>
    %c0_36 = arith.constant 0 : index
    %c0_37 = arith.constant 0 : index
    %43 = vector.load %arg14[%c0_36, %c0_37] : memref<64x32xf32, #tpu.memory_space<vmem>>, vector<64x32xf32>
    %c0_38 = arith.constant 0 : index
    %c0_39 = arith.constant 0 : index
    %44 = vector.load %arg15[%c0_38, %c0_39] : memref<64x1xf32, #tpu.memory_space<vmem>>, vector<64x1xf32>
    %cst_40 = arith.constant dense<0.000000e+00> : vector<64x128xf32>
    %45 = tpu.matmul %43, %42, %cst_40 {dimension_numbers = #tpu.dot_dimension_numbers<[1], [0], [0], [1], [0, 0, 1, 1], [], []>} : vector<64x32xf32>, vector<32x128xf32>, vector<64x128xf32> -> vector<64x128xf32>
    %46 = vector.broadcast %44 : vector<64x1xf32> to vector<64x128xf32>
    %47 = arith.addf %45, %46 : vector<64x128xf32>
    %cst_41 = arith.constant 0.000000e+00 : f32
    %48 = vector.broadcast %cst_41 : f32 to vector<64x128xf32>
    %49 = arith.maximumf %47, %48 : vector<64x128xf32>
    %c0_42 = arith.constant 0 : index
    %c0_43 = arith.constant 0 : index
    %50 = vector.load %arg16[%c0_42, %c0_43] : memref<64x64xf32, #tpu.memory_space<vmem>>, vector<64x64xf32>
    %c0_44 = arith.constant 0 : index
    %c0_45 = arith.constant 0 : index
    %51 = vector.load %arg17[%c0_44, %c0_45] : memref<64x1xf32, #tpu.memory_space<vmem>>, vector<64x1xf32>
    %cst_46 = arith.constant dense<0.000000e+00> : vector<64x128xf32>
    %52 = tpu.matmul %50, %49, %cst_46 {dimension_numbers = #tpu.dot_dimension_numbers<[1], [0], [0], [1], [0, 0, 1, 1], [], []>} : vector<64x64xf32>, vector<64x128xf32>, vector<64x128xf32> -> vector<64x128xf32>
    %53 = vector.broadcast %51 : vector<64x1xf32> to vector<64x128xf32>
    %54 = arith.addf %52, %53 : vector<64x128xf32>
    %cst_47 = arith.constant 0.000000e+00 : f32
    %55 = vector.broadcast %cst_47 : f32 to vector<64x128xf32>
    %56 = arith.maximumf %54, %55 : vector<64x128xf32>
    %c0_48 = arith.constant 0 : index
    %c0_49 = arith.constant 0 : index
    %57 = vector.load %arg18[%c0_48, %c0_49] : memref<24x64xf32, #tpu.memory_space<vmem>>, vector<24x64xf32>
    %c0_50 = arith.constant 0 : index
    %c0_51 = arith.constant 0 : index
    %58 = vector.load %arg19[%c0_50, %c0_51] : memref<24x1xf32, #tpu.memory_space<vmem>>, vector<24x1xf32>
    %cst_52 = arith.constant dense<0.000000e+00> : vector<24x128xf32>
    %59 = tpu.matmul %57, %56, %cst_52 {dimension_numbers = #tpu.dot_dimension_numbers<[1], [0], [0], [1], [0, 0, 1, 1], [], []>} : vector<24x64xf32>, vector<64x128xf32>, vector<24x128xf32> -> vector<24x128xf32>
    %60 = vector.broadcast %58 : vector<24x1xf32> to vector<24x128xf32>
    %61 = arith.addf %59, %60 : vector<24x128xf32>
    %c0_53 = arith.constant 0 : index
    %c0_54 = arith.constant 0 : index
    %62 = vector.load %arg20[%c0_53, %c0_54] : memref<24x128xf32, #tpu.memory_space<vmem>>, vector<24x128xf32>
    tpu.vector_store %arg20[%c0_53, %c0_54], %61 {strides = array<i32>} : memref<24x128xf32, #tpu.memory_space<vmem>>, vector<24x128xf32>,
    return
  }
  func.func @transform_0(%arg0: i32) -> (i32, i32) {
    %c0_i32 = arith.constant 0 : i32
    %c0_i32_0 = arith.constant 0 : i32
    return %c0_i32, %arg0 : i32, i32
  }
  func.func @transform_1(%arg0: i32) -> (i32, i32) {
    %c0_i32 = arith.constant 0 : i32
    %c0_i32_0 = arith.constant 0 : i32
    %c0_i32_1 = arith.constant 0 : i32
    return %c0_i32, %c0_i32_0 : i32, i32
  }
  func.func @transform_2(%arg0: i32) -> (i32, i32) {
    %c0_i32 = arith.constant 0 : i32
    %c0_i32_0 = arith.constant 0 : i32
    %c0_i32_1 = arith.constant 0 : i32
    return %c0_i32, %c0_i32_0 : i32, i32
  }
  func.func @transform_3(%arg0: i32) -> (i32, i32) {
    %c0_i32 = arith.constant 0 : i32
    %c0_i32_0 = arith.constant 0 : i32
    %c0_i32_1 = arith.constant 0 : i32
    return %c0_i32, %c0_i32_0 : i32, i32
  }
  func.func @transform_4(%arg0: i32) -> (i32, i32) {
    %c0_i32 = arith.constant 0 : i32
    %c0_i32_0 = arith.constant 0 : i32
    %c0_i32_1 = arith.constant 0 : i32
    return %c0_i32, %c0_i32_0 : i32, i32
  }
  func.func @transform_5(%arg0: i32) -> (i32, i32) {
    %c0_i32 = arith.constant 0 : i32
    %c0_i32_0 = arith.constant 0 : i32
    %c0_i32_1 = arith.constant 0 : i32
    return %c0_i32, %c0_i32_0 : i32, i32
  }
  func.func @transform_6(%arg0: i32) -> (i32, i32) {
    %c0_i32 = arith.constant 0 : i32
    %c0_i32_0 = arith.constant 0 : i32
    %c0_i32_1 = arith.constant 0 : i32
    return %c0_i32, %c0_i32_0 : i32, i32
  }
  func.func @transform_7(%arg0: i32) -> (i32, i32) {
    %c0_i32 = arith.constant 0 : i32
    %c0_i32_0 = arith.constant 0 : i32
    %c0_i32_1 = arith.constant 0 : i32
    return %c0_i32, %c0_i32_0 : i32, i32
  }
  func.func @transform_8(%arg0: i32) -> (i32, i32) {
    %c0_i32 = arith.constant 0 : i32
    %c0_i32_0 = arith.constant 0 : i32
    %c0_i32_1 = arith.constant 0 : i32
    return %c0_i32, %c0_i32_0 : i32, i32
  }
  func.func @transform_9(%arg0: i32) -> (i32, i32) {
    %c0_i32 = arith.constant 0 : i32
    %c0_i32_0 = arith.constant 0 : i32
    %c0_i32_1 = arith.constant 0 : i32
    return %c0_i32, %c0_i32_0 : i32, i32
  }
  func.func @transform_10(%arg0: i32) -> (i32, i32) {
    %c0_i32 = arith.constant 0 : i32
    %c0_i32_0 = arith.constant 0 : i32
    %c0_i32_1 = arith.constant 0 : i32
    return %c0_i32, %c0_i32_0 : i32, i32
  }
  func.func @transform_11(%arg0: i32) -> (i32, i32) {
    %c0_i32 = arith.constant 0 : i32
    %c0_i32_0 = arith.constant 0 : i32
    %c0_i32_1 = arith.constant 0 : i32
    return %c0_i32, %c0_i32_0 : i32, i32
  }
  func.func @transform_12(%arg0: i32) -> (i32, i32) {
    %c0_i32 = arith.constant 0 : i32
    %c0_i32_0 = arith.constant 0 : i32
    %c0_i32_1 = arith.constant 0 : i32
    return %c0_i32, %c0_i32_0 : i32, i32
  }
  func.func @transform_13(%arg0: i32) -> (i32, i32) {
    %c0_i32 = arith.constant 0 : i32
    %c0_i32_0 = arith.constant 0 : i32
    %c0_i32_1 = arith.constant 0 : i32
    return %c0_i32, %c0_i32_0 : i32, i32
  }
  func.func @transform_14(%arg0: i32) -> (i32, i32) {
    %c0_i32 = arith.constant 0 : i32
    %c0_i32_0 = arith.constant 0 : i32
    %c0_i32_1 = arith.constant 0 : i32
    return %c0_i32, %c0_i32_0 : i32, i32
  }
  func.func @transform_15(%arg0: i32) -> (i32, i32) {
    %c0_i32 = arith.constant 0 : i32
    %c0_i32_0 = arith.constant 0 : i32
    %c0_i32_1 = arith.constant 0 : i32
    return %c0_i32, %c0_i32_0 : i32, i32
  }
  func.func @transform_16(%arg0: i32) -> (i32, i32) {
    %c0_i32 = arith.constant 0 : i32
    %c0_i32_0 = arith.constant 0 : i32
    %c0_i32_1 = arith.constant 0 : i32
    return %c0_i32, %c0_i32_0 : i32, i32
  }
  func.func @transform_17(%arg0: i32) -> (i32, i32) {
    %c0_i32 = arith.constant 0 : i32
    %c0_i32_0 = arith.constant 0 : i32
    %c0_i32_1 = arith.constant 0 : i32
    return %c0_i32, %c0_i32_0 : i32, i32
  }
  func.func @transform_18(%arg0: i32) -> (i32, i32) {
    %c0_i32 = arith.constant 0 : i32
    %c0_i32_0 = arith.constant 0 : i32
    %c0_i32_1 = arith.constant 0 : i32
    return %c0_i32, %c0_i32_0 : i32, i32
  }
  func.func @transform_19(%arg0: i32) -> (i32, i32) {
    %c0_i32 = arith.constant 0 : i32
    %c0_i32_0 = arith.constant 0 : i32
    return %c0_i32, %arg0 : i32, i32
  }
}

</mosaic_0001>

<bundles_post_ra>
// kernel: tpu_custom_call.1
= control target key start
LH: loop header
LB: loop body
LE: loop exit
PB: predicated region body
PF: predicated region fallthrough
CT: control target
= control target key end

     0   :  { %s2213_s0 = inlined_call_operand.vmem [shape: f32[24,128], index: 0, kind: input, shape index: {}]   ;;  %s2214_s1 = inlined_call_operand.vmem [shape: f32[64,24], index: 1, kind: input, shape index: {}]   ;;  %s2215_s2 = inlined_call_operand.vmem [shape: f32[64,1], index: 2, kind: input, shape index: {}]   ;;  %s2216_s3 = inlined_call_operand.vmem [shape: f32[64,64], index: 3, kind: input, shape index: {}]   ;;  %s2217_s4 = inlined_call_operand.vmem [shape: f32[64,1], index: 4, kind: input, shape index: {}]   ;;  %s2218_s5 = inlined_call_operand.vmem [shape: f32[32,64], index: 5, kind: input, shape index: {}]   ;;  %s2219_s6 = inlined_call_operand.vmem [shape: f32[32,1], index: 6, kind: input, shape index: {}]   ;;  %s2220_s7 = inlined_call_operand.vmem [shape: f32[16,32], index: 7, kind: input, shape index: {}]   ;;  %s2221_s8 = inlined_call_operand.vmem [shape: f32[16,1], index: 8, kind: input, shape index: {}]   ;;  %s2222_s9 = inlined_call_operand.vmem [shape: f32[16,16], index: 9, kind: input, shape index: {}]   ;;  %s2223_s10 = inlined_call_operand.vmem [shape: f32[16,1], index: 10, kind: input, shape index: {}]   ;;  %s2224_s11 = inlined_call_operand.vmem [shape: f32[32,16], index: 11, kind: input, shape index: {}]   ;;  %s2225_s12 = inlined_call_operand.vmem [shape: f32[32,1], index: 12, kind: input, shape index: {}]   ;;  %s2226_s13 = inlined_call_operand.vmem [shape: f32[64,32], index: 13, kind: input, shape index: {}]   ;;  %s2227_s14 = inlined_call_operand.vmem [shape: f32[64,1], index: 14, kind: input, shape index: {}]   ;;  %s2228_s15 = inlined_call_operand.vmem [shape: f32[64,64], index: 15, kind: input, shape index: {}]   ;;  %s2229_s16 = inlined_call_operand.vmem [shape: f32[64,1], index: 16, kind: input, shape index: {}]   ;;  %s2230_s17 = inlined_call_operand.vmem [shape: f32[24,64], index: 17, kind: input, shape index: {}]   ;;  %s2231_s18 = inlined_call_operand.vmem [shape: f32[24,1], index: 18, kind: input, shape index: {}]   ;;  %s2232_s19 = inlined_call_operand.hbm [shape: f32[24,128], index: 19, kind: output, shape index: {}]  }
   0x1   :  { %2238 = sst [smem:[#allocation5_spill]] %s2213_s0 }
   0x2   :  { %2239 = sst [smem:[#allocation6_spill]] %s2214_s1 }
   0x3   :  { %2240 = sst [smem:[#allocation7_spill]] %s2215_s2 }
   0x4   :  { %2241 = sst [smem:[#allocation8_spill]] %s2216_s3 }
   0x5   :  { %2242 = sst [smem:[#allocation9_spill]] %s2226_s13 }
   0x6   :  { %s2243_s20 = sld [smem:[#allocation5_spill]]  ;;  %v1763_v3 = vmov 0   ;;  %vm122_vm0 = vcmask 195584   ;;  %v275_v19 = vld [vmem:[%s2217_s4 + $0x38] sm:$0xff]  ;;  %v274_v20 = vld [vmem:[%s2217_s4 + $0x30] sm:$0xff]  ;;  %v273_v22 = vld [vmem:[%s2217_s4 + $0x28] sm:$0xff] }
   0x7   :  { %s2244_s13 = sld [smem:[#allocation7_spill]]  ;;  %1740 = vset.pattern.permute.xlu1 %v1763_v3  ;;  %1739 = vset.pattern.permute.xlu0 %v1763_v3 }
   0x8   :  { %s2245_s26 = sld [smem:[#allocation6_spill]] }
   0xc   :  { %v65_v0 = vld [vmem:[%s2243_s20 + $0x10] sm:$0xff]  ;;  %v64_v4 = vld [vmem:[%s2243_s20 + $0x8] sm:$0xff]  ;;  %v63_v6 = vld [vmem:[%s2243_s20] sm:$0xff] }
   0xd   :  { %v81_v1 = vld [vmem:[%s2244_s13 + $0x38] sm:$0xff]  ;;  %v79_v2 = vld [vmem:[%s2244_s13 + $0x28] sm:$0xff]  ;;  %1564 = vmatprep.subr.mxu0 %v65_v0  ;;  %v80_v7 = vld [vmem:[%s2244_s13 + $0x30] sm:$0xff] }
   0xe   :  { %119 = vperm.xlu0 %1739, %v81_v1   ;;  %v66_v5 = vld [vmem:[%s2245_s26] sm:$0xff]  ;;  %109 = vperm.xlu1 %1740, %v79_v2   ;;  %v67_v9 = vld [vmem:[%s2245_s26 + $0x8] sm:$0xff]  ;;  %v68_v10 = vld [vmem:[%s2245_s26 + $0x10] sm:$0xff] }
   0xf   :  { %1565 = vmatpush3.msra.mxu0 %v65_v0  ;;  %v78_v8 = vld [vmem:[%s2244_s13 + $0x20] sm:$0xff]  ;;  %1570 = vmatprep.mubr.msk.f32.mxu0 %vm122_vm0, %v66_v5  ;;  %v77_v11 = vld [vmem:[%s2244_s13 + $0x18] sm:$0xff]  ;;  %v76_v12 = vld [vmem:[%s2244_s13 + $0x10] sm:$0xff] }
  0x10   :  { %1566 = vmatprep.subr.mxu0 %v64_v4  ;;  %v69_v13 = vld [vmem:[%s2245_s26 + $0x18] sm:$0xff]  ;;  %v70_v14 = vld [vmem:[%s2245_s26 + $0x20] sm:$0xff]  ;;  %v75_v15 = vld [vmem:[%s2244_s13 + $0x8] sm:$0xff] }
  0x11   :  { %1567 = vmatpush3.msra.mxu0 %v64_v4  ;;  %v74_v16 = vld [vmem:[%s2244_s13] sm:$0xff]  ;;  %v71_v17 = vld [vmem:[%s2245_s26 + $0x28] sm:$0xff]  ;;  %v72_v18 = vld [vmem:[%s2245_s26 + $0x30] sm:$0xff] }
  0x12   :  { %1568 = vmatprep.subr.mxu0 %v63_v6  ;;  %114 = vperm.xlu0 %1739, %v80_v7   ;;  %v73_v21 = vld [vmem:[%s2245_s26 + $0x38] sm:$0xff] }
  0x13   :  { %104 = vperm.xlu1 %1740, %v78_v8   ;;  %1569 = vmatpush3.msra.mxu0 %v63_v6 }
  0x14   :  { %1571 = vmatmul.mubr.msk.f32.vlgmr.msra.gmra.mxu0 %vm122_vm0, %v67_v9 }
  0x15   :  { %1573 = vmatprep.mubr.msk.f32.mxu0 %vm122_vm0, %v68_v10 }
  0x16   :  { %99 = vperm.xlu0 %1739, %v77_v11  }
  0x17   :  { %94 = vperm.xlu1 %1740, %v76_v12  }
  0x18   :  { %1574 = vmatmul.mubr.msk.f32.gmra.mxu0 %vm122_vm0, %v69_v13 }
  0x19   :  { %1576 = vmatprep.mubr.msk.f32.mxu0 %vm122_vm0, %v70_v14 }
  0x1a   :  { %89 = vperm.xlu0 %1739, %v75_v15  }
  0x1b   :  { %84 = vperm.xlu1 %1740, %v74_v16  }
  0x1c   :  { %1577 = vmatmul.mubr.msk.f32.gmra.mxu0 %vm122_vm0, %v71_v17 }
  0x1d   :  { %1579 = vmatprep.mubr.msk.f32.mxu0 %vm122_vm0, %v72_v18 }
  0x1e   :  { %313 = vperm.xlu0 %1739, %v275_v19  }
  0x1f   :  { %308 = vperm.xlu1 %1740, %v274_v20  }
  0x20   :  { %24 = vsyncpa [#allocation3], 0  ;;  %1580 = vmatmul.mubr.msk.f32.gmra.mxu0 %vm122_vm0, %v73_v21  ;;  %v272_v23 = vld [vmem:[%s2217_s4 + $0x20] sm:$0xff]  ;;  %v271_v24 = vld [vmem:[%s2217_s4 + $0x18] sm:$0xff]  ;;  %vm316_vm1 = vcmask 523264   ;;  %vm597_vm2 = vcmask 261120  }
  0x21   :  { %v270_v25 = vld [vmem:[%s2217_s4 + $0x10] sm:$0xff]  ;;  %v269_v26 = vld [vmem:[%s2217_s4 + $0x8] sm:$0xff]  ;;  %v268_v27 = vld [vmem:[%s2217_s4] sm:$0xff]  ;;  %vm695_vm3 = vcmask 130048   ;;  %vm1765_vm4 = vmmov 0   ;;  %s1766_s27 = smov [#allocation2]  }
  0x22   :  { %303 = vperm.xlu0 %1739, %v273_v22   ;;  %v461_v28 = vld [vmem:[%s2219_s6 + $0x18] sm:$0xff]  ;;  %v460_v29 = vld [vmem:[%s2219_s6 + $0x10] sm:$0xff]  ;;  %v459_v30 = vld [vmem:[%s2219_s6 + $0x8] sm:$0xff]  ;;  %s1412_s13 = sshll.u32 %s1766_s27, 4  ;;  %s1413_s13 = int_to_ptr.vmem [resolvable:$true] %s1412_s13 }
  0x23   :  { %298 = vperm.xlu1 %1740, %v272_v23   ;;  %v458_v31 = vld [vmem:[%s2219_s6] sm:$0xff]  ;;  %v586_v32 = vld [vmem:[%s2221_s8 + $0x8] sm:$0xff]  ;;  %v786_v36 = vld [vmem:[%s2225_s12 + $0x18] sm:$0xff]  ;;  %p1746_p1 = scmp.lt.s32.totalorder %s1413_s13, %s1413_s13 }
  0x24   :  { %v585_v33 = vld [vmem:[%s2221_s8] sm:$0xff]  ;;  %v684_v34 = vld [vmem:[%s2223_s10 + $0x8] sm:$0xff]  ;;  %v785_v37 = vld [vmem:[%s2225_s12 + $0x10] sm:$0xff] }
  0x25   :  { %v683_v35 = vld [vmem:[%s2223_s10] sm:$0xff]  ;;  %v784_v38 = vld [vmem:[%s2225_s12 + $0x8] sm:$0xff]  ;;  %v923_v40 = vld [vmem:[%s2227_s14 + $0x38] sm:$0xff] }
  0x26   :  { %293 = vperm.xlu0 %1739, %v271_v24   ;;  %v783_v39 = vld [vmem:[%s2225_s12] sm:$0xff]  ;;  %v922_v41 = vld [vmem:[%s2227_s14 + $0x30] sm:$0xff]  ;;  %v921_v42 = vld [vmem:[%s2227_s14 + $0x28] sm:$0xff]  ;;  %s2247_s12 = sld [smem:[#allocation9_spill]] }
  0x27   :  { %288 = vperm.xlu1 %1740, %v270_v25   ;;  %v920_v43 = vld [vmem:[%s2227_s14 + $0x20] sm:$0xff]  ;;  %v919_v44 = vld [vmem:[%s2227_s14 + $0x18] sm:$0xff]  ;;  %v918_v45 = vld [vmem:[%s2227_s14 + $0x10] sm:$0xff] }
  0x28   :  { %v917_v46 = vld [vmem:[%s2227_s14 + $0x8] sm:$0xff]  ;;  %v916_v47 = vld [vmem:[%s2227_s14] sm:$0xff]  ;;  %v1116_v48 = vld [vmem:[%s2229_s16 + $0x38] sm:$0xff] }
  0x29   :  { %v1115_v49 = vld [vmem:[%s2229_s16 + $0x30] sm:$0xff]  ;;  %v1114_v50 = vld [vmem:[%s2229_s16 + $0x28] sm:$0xff]  ;;  %v1113_v51 = vld [vmem:[%s2229_s16 + $0x20] sm:$0xff] }
  0x2a   :  { %283 = vperm.xlu0 %1739, %v269_v26   ;;  %v1112_v52 = vld [vmem:[%s2229_s16 + $0x18] sm:$0xff]  ;;  %v1111_v53 = vld [vmem:[%s2229_s16 + $0x10] sm:$0xff]  ;;  %v1110_v54 = vld [vmem:[%s2229_s16 + $0x8] sm:$0xff] }
  0x2b   :  { %278 = vperm.xlu1 %1740, %v268_v27   ;;  %v1109_v55 = vld [vmem:[%s2229_s16] sm:$0xff]  ;;  %v1298_v57 = vld [vmem:[%s2231_s18 + $0x8] sm:$0xff]  ;;  %v1299_v58 = vld [vmem:[%s2231_s18 + $0x10] sm:$0xff]  ;;  %s2246_s16 = sld [smem:[#allocation8_spill]] }
  0x2c   :  { %v1297_v56 = vld [vmem:[%s2231_s18] sm:$0xff] }
  0x2e   :  { %479 = vperm.xlu0 %1739, %v461_v28  }
  0x2f   :  { %474 = vperm.xlu1 %1740, %v460_v29  }
  0x31   :  { %v260_v59 = vld [vmem:[%s2246_s16] sm:$0xff]  ;;  %v261_v28 = vld [vmem:[%s2246_s16 + $0x8] sm:$0xff]  ;;  %v262_v29 = vld [vmem:[%s2246_s16 + $0x10] sm:$0xff] }
  0x32   :  { %469 = vperm.xlu0 %1739, %v459_v30   ;;  %1598 = vmatprep.mubr.msk.f32.mxu1 %vm316_vm1, %v260_v59  ;;  %v263_v30 = vld [vmem:[%s2246_s16 + $0x18] sm:$0xff] }
  0x33   :  { %464 = vperm.xlu1 %1740, %v458_v31   ;;  %v264_v31 = vld [vmem:[%s2246_s16 + $0x20] sm:$0xff] }
  0x36   :  { %594 = vperm.xlu0 %1739, %v586_v32   ;;  %v265_v32 = vld [vmem:[%s2246_s16 + $0x28] sm:$0xff] }
  0x37   :  { %589 = vperm.xlu1 %1740, %v585_v33   ;;  %v266_v33 = vld [vmem:[%s2246_s16 + $0x30] sm:$0xff] }
  0x3a   :  { %692 = vperm.xlu0 %1739, %v684_v34   ;;  %v267_v34 = vld [vmem:[%s2246_s16 + $0x38] sm:$0xff] }
  0x3b   :  { %687 = vperm.xlu1 %1740, %v683_v35   ;;  %v454_v35 = vld [vmem:[%s2218_s5] sm:$0xff] }
  0x3c   :  { %1626 = vmatprep.mubr.msk.f32.mxu0 %vm316_vm1, %v454_v35  ;;  %v779_v35 = vld [vmem:[%s2224_s11] sm:$0xff] }
  0x3e   :  { %804 = vperm.xlu0 %1739, %v786_v36  }
  0x3f   :  { %799 = vperm.xlu1 %1740, %v785_v37  }
  0x42   :  { %794 = vperm.xlu0 %1739, %v784_v38  }
  0x43   :  { %789 = vperm.xlu1 %1740, %v783_v39  }
  0x46   :  { %961 = vperm.xlu0 %1739, %v923_v40  }
  0x47   :  { %956 = vperm.xlu1 %1740, %v922_v41  }
  0x4a   :  { %951 = vperm.xlu0 %1739, %v921_v42  }
  0x4b   :  { %946 = vperm.xlu1 %1740, %v920_v43  }
  0x4e   :  { %941 = vperm.xlu0 %1739, %v919_v44  }
  0x4f   :  { %936 = vperm.xlu1 %1740, %v918_v45  }
  0x52   :  { %931 = vperm.xlu0 %1739, %v917_v46  }
  0x53   :  { %926 = vperm.xlu1 %1740, %v916_v47  }
  0x56   :  { %1154 = vperm.xlu0 %1739, %v1116_v48  }
  0x57   :  { %1149 = vperm.xlu1 %1740, %v1115_v49  }
  0x5a   :  { %1144 = vperm.xlu0 %1739, %v1114_v50  }
  0x5b   :  { %1139 = vperm.xlu1 %1740, %v1113_v51  }
  0x5e   :  { %1134 = vperm.xlu0 %1739, %v1112_v52  }
  0x5f   :  { %1129 = vperm.xlu1 %1740, %v1111_v53  }
  0x62   :  { %1124 = vperm.xlu0 %1739, %v1110_v54  }
  0x63   :  { %1119 = vperm.xlu1 %1740, %v1109_v55  }
  0x66   :  { %1302 = vperm.xlu0 %1739, %v1297_v56  }
  0x67   :  { %1307 = vperm.xlu1 %1740, %v1298_v57  }
  0x6a   :  { %1312 = vperm.xlu0 %1739, %v1299_v58  }
  0x89   :  { %v120_v62 = vpop.permute.xlu0 %119  ;;  %v110_v0 = vpop.permute.xlu1 %109 }
  0x8d   :  { %v115_v3 = vpop.permute.xlu0 %114 }
  0x8e   :  { %v105_v5 = vpop.permute.xlu1 %104 }
  0x91   :  { %v100_v12 = vpop.permute.xlu0 %99 }
  0x92   :  { %v95_v15 = vpop.permute.xlu1 %94 }
  0x95   :  { %v90_v20 = vpop.permute.xlu0 %89 }
  0x96   :  { %v85_v23 = vpop.permute.xlu1 %84 }
  0x99   :  { %v314_v38 = vpop.permute.xlu0 %313 }
  0x9a   :  { %v309_v40 = vpop.permute.xlu1 %308 }
  0x9d   :  { %v304_v43 = vpop.permute.xlu0 %303 }
  0x9e   :  { %v299_v45 = vpop.permute.xlu1 %298 }
  0xa1   :  { %v294_v52 = vpop.permute.xlu0 %293 }
  0xa2   :  { %v289_v55 = vpop.permute.xlu1 %288 }
  0xd4   :  { %v1572_v60 = vpop.f32.mrf.mxu0 }
  0xd5   :  { %v219_v21 = vadd.f32 %v1572_v60, %v90_v20  ;;  %v284_v60 = vpop.permute.xlu0 %283 }
  0xd6   :  { %v213_v61 = vpop.f32.mrf.mxu0 }
  0xd7   :  { %v214_v24 = vadd.f32 %v213_v61, %v85_v23  ;;  %v253_v26 = vmax.f32 %v219_v21, 0.0 }
  0xd8   :  { %v1575_v63 = vpop.f32.mrf.mxu0 }
  0xd9   :  { %v229_v16 = vadd.f32 %v1575_v63, %v100_v12  ;;  %v252_v27 = vmax.f32 %v214_v24, 0.0  ;;  %v279_v63 = vpop.permute.xlu1 %278  ;;  %v584_v24 = vld [vmem:[%s2220_s7 + $0x8] sm:$0xff] }
  0xda   :  { %v223_v1 = vpop.f32.mrf.mxu0 }
  0xdb   :  { %v224_v18 = vadd.f32 %v223_v1, %v95_v15  ;;  %v255_v22 = vmax.f32 %v229_v16, 0.0 }
  0xdc   :  { %v1578_v2 = vpop.f32.mrf.mxu0 }
  0xdd   :  { %v239_v9 = vadd.f32 %v1578_v2, %v110_v0  ;;  %v254_v25 = vmax.f32 %v224_v18, 0.0 }
  0xde   :  { %v233_v4 = vpop.f32.mrf.mxu0 }
  0xdf   :  { %v234_v13 = vadd.f32 %v233_v4, %v105_v5  ;;  %v257_v17 = vmax.f32 %v239_v9, 0.0  ;;  %v455_v4 = vld [vmem:[%s2218_s5 + $0x8] sm:$0xff]  ;;  %v456_v5 = vld [vmem:[%s2218_s5 + $0x10] sm:$0xff] }
  0xe0   :  { %v1581_v6 = vpop.f32.mrf.mxu0 }
  0xe1   :  { %v249_v7 = vadd.f32 %v1581_v6, %v120_v62  ;;  %v256_v19 = vmax.f32 %v234_v13, 0.0  ;;  %v457_v6 = vld [vmem:[%s2218_s5 + $0x18] sm:$0xff] }
  0xe2   :  { %v243_v8 = vpop.f32.mrf.mxu0 }
  0xe3   :  { %v259_v10 = vmax.f32 %v249_v7, 0.0  ;;  %v244_v11 = vadd.f32 %v243_v8, %v115_v3  ;;  %v583_v7 = vld [vmem:[%s2220_s7] sm:$0xff]  ;;  %v480_v8 = vpop.permute.xlu0 %479 }
  0xe5   :  { %v258_v14 = vmax.f32 %v244_v11, 0.0  ;;  %1582 = vmatprep.subr.mxu1 %v259_v10 }
  0xe6   :  { %1583 = vmatpush3.msra.mxu1 %v259_v10  ;;  %v475_v10 = vpop.permute.xlu1 %474 }
  0xe7   :  { %1584 = vmatprep.subr.mxu1 %v258_v14 }
  0xe8   :  { %1585 = vmatpush3.msra.mxu1 %v258_v14  ;;  %v470_v14 = vpop.permute.xlu0 %469 }
  0xe9   :  { %1586 = vmatprep.subr.mxu1 %v257_v17 }
  0xea   :  { %1587 = vmatpush3.msra.mxu1 %v257_v17 }
  0xeb   :  { %1588 = vmatprep.subr.mxu1 %v256_v19 }
  0xec   :  { %1589 = vmatpush3.msra.mxu1 %v256_v19  ;;  %v465_v19 = vpop.permute.xlu1 %464 }
  0xed   :  { %1590 = vmatprep.subr.mxu1 %v255_v22 }
  0xee   :  { %1591 = vmatpush3.msra.mxu1 %v255_v22 }
  0xef   :  { %1592 = vmatprep.subr.mxu1 %v254_v25 }
  0xf0   :  { %1593 = vmatpush3.msra.mxu1 %v254_v25  ;;  %v681_v25 = vld [vmem:[%s2222_s9] sm:$0xff] }
  0xf1   :  { %1594 = vmatprep.subr.mxu1 %v253_v26 }
  0xf2   :  { %1595 = vmatpush3.msra.mxu1 %v253_v26  ;;  %v595_v26 = vpop.permute.xlu0 %594 }
  0xf3   :  { %1596 = vmatprep.subr.mxu1 %v252_v27 }
  0xf4   :  { %1597 = vmatpush3.msra.mxu1 %v252_v27 }
  0xf5   :  { %1599 = vmatmul.mubr.msk.f32.vlgmr.msra.gmra.mxu1 %vm316_vm1, %v261_v28 }
  0xf6   :  { %1601 = vmatprep.mubr.msk.f32.mxu1 %vm316_vm1, %v262_v29  ;;  %v590_v29 = vpop.permute.xlu1 %589 }
  0xf9   :  { %1602 = vmatmul.mubr.msk.f32.gmra.mxu1 %vm316_vm1, %v263_v30 }
  0xfa   :  { %1604 = vmatprep.mubr.msk.f32.mxu1 %vm316_vm1, %v264_v31 }
  0xfd   :  { %1605 = vmatmul.mubr.msk.f32.gmra.mxu1 %vm316_vm1, %v265_v32 }
  0xfe   :  { %1607 = vmatprep.mubr.msk.f32.mxu1 %vm316_vm1, %v266_v33 }
 0x101   :  { %1608 = vmatmul.mubr.msk.f32.gmra.mxu1 %vm316_vm1, %v267_v34  ;;  %v682_v34 = vld [vmem:[%s2222_s9 + $0x8] sm:$0xff] }
 0x102   :  { %1647 = vmatprep.mubr.msk.f32.mxu1 %vm695_vm3, %v681_v25 }
 0x1b5   :  { %v1600_v36 = vpop.f32.mrf.mxu1 }
 0x1b6   :  { %v413_v61 = vadd.f32 %v1600_v36, %v284_v60  ;;  %v693_v36 = vpop.permute.xlu0 %692 }
 0x1b7   :  { %v407_v37 = vpop.f32.mrf.mxu1 }
 0x1b8   :  { %v408_v0 = vadd.f32 %v407_v37, %v279_v63  ;;  %v447_v2 = vmax.f32 %v413_v61, 0.0 }
 0x1b9   :  { %v1603_v39 = vpop.f32.mrf.mxu1 }
 0x1ba   :  { %v423_v56 = vadd.f32 %v1603_v39, %v294_v52  ;;  %v446_v3 = vmax.f32 %v408_v0, 0.0  ;;  %v688_v39 = vpop.permute.xlu1 %687  ;;  %v909_v0 = vld [vmem:[%s2247_s12 + $0x8] sm:$0xff] }
 0x1bb   :  { %v417_v41 = vpop.f32.mrf.mxu1 }
 0x1bc   :  { %v418_v58 = vadd.f32 %v417_v41, %v289_v55  ;;  %v449_v62 = vmax.f32 %v423_v56, 0.0 }
 0x1bd   :  { %v1606_v42 = vpop.f32.mrf.mxu1 }
 0x1be   :  { %v433_v49 = vadd.f32 %v1606_v42, %v304_v43  ;;  %v448_v1 = vmax.f32 %v418_v58, 0.0 }
 0x1bf   :  { %v427_v44 = vpop.f32.mrf.mxu1 }
 0x1c0   :  { %v428_v53 = vadd.f32 %v427_v44, %v299_v45  ;;  %v451_v57 = vmax.f32 %v433_v49, 0.0  ;;  %v780_v44 = vld [vmem:[%s2224_s11 + $0x8] sm:$0xff]  ;;  %v781_v45 = vld [vmem:[%s2224_s11 + $0x10] sm:$0xff] }
 0x1c1   :  { %v1609_v46 = vpop.f32.mrf.mxu1 }
 0x1c2   :  { %v443_v47 = vadd.f32 %v1609_v46, %v314_v38  ;;  %v450_v59 = vmax.f32 %v428_v53, 0.0  ;;  %v782_v46 = vld [vmem:[%s2224_s11 + $0x18] sm:$0xff] }
 0x1c3   :  { %v437_v48 = vpop.f32.mrf.mxu1 }
 0x1c4   :  { %v453_v50 = vmax.f32 %v443_v47, 0.0  ;;  %v438_v51 = vadd.f32 %v437_v48, %v309_v40  ;;  %v908_v47 = vld [vmem:[%s2247_s12] sm:$0xff]  ;;  %v805_v48 = vpop.permute.xlu0 %804 }
 0x1c6   :  { %v452_v54 = vmax.f32 %v438_v51, 0.0  ;;  %1610 = vmatprep.subr.mxu0 %v453_v50 }
 0x1c7   :  { %1611 = vmatpush3.msra.mxu0 %v453_v50  ;;  %v800_v50 = vpop.permute.xlu1 %799 }
 0x1c8   :  { %1612 = vmatprep.subr.mxu0 %v452_v54 }
 0x1c9   :  { %1613 = vmatpush3.msra.mxu0 %v452_v54  ;;  %v795_v54 = vpop.permute.xlu0 %794 }
 0x1ca   :  { %1614 = vmatprep.subr.mxu0 %v451_v57 }
 0x1cb   :  { %1615 = vmatpush3.msra.mxu0 %v451_v57 }
 0x1cc   :  { %1616 = vmatprep.subr.mxu0 %v450_v59 }
 0x1cd   :  { %1617 = vmatpush3.msra.mxu0 %v450_v59  ;;  %v790_v59 = vpop.permute.xlu1 %789 }
 0x1ce   :  { %1618 = vmatprep.subr.mxu0 %v449_v62 }
 0x1cf   :  { %1619 = vmatpush3.msra.mxu0 %v449_v62 }
 0x1d0   :  { %1620 = vmatprep.subr.mxu0 %v448_v1 }
 0x1d1   :  { %1621 = vmatpush3.msra.mxu0 %v448_v1  ;;  %v910_v1 = vld [vmem:[%s2247_s12 + $0x10] sm:$0xff] }
 0x1d2   :  { %1622 = vmatprep.subr.mxu0 %v447_v2 }
 0x1d3   :  { %1623 = vmatpush3.msra.mxu0 %v447_v2  ;;  %v911_v2 = vld [vmem:[%s2247_s12 + $0x18] sm:$0xff] }
 0x1d4   :  { %1624 = vmatprep.subr.mxu0 %v446_v3 }
 0x1d5   :  { %1625 = vmatpush3.msra.mxu0 %v446_v3  ;;  %v912_v3 = vld [vmem:[%s2247_s12 + $0x20] sm:$0xff] }
 0x1d6   :  { %1627 = vmatmul.mubr.msk.f32.vlgmr.msra.gmra.mxu0 %vm316_vm1, %v455_v4  ;;  %v913_v4 = vld [vmem:[%s2247_s12 + $0x28] sm:$0xff] }
 0x1d7   :  { %1629 = vmatprep.mubr.msk.f32.mxu0 %vm316_vm1, %v456_v5  ;;  %v914_v5 = vld [vmem:[%s2247_s12 + $0x30] sm:$0xff] }
 0x1da   :  { %1630 = vmatmul.mubr.msk.f32.gmra.mxu0 %vm316_vm1, %v457_v6  ;;  %v915_v6 = vld [vmem:[%s2247_s12 + $0x38] sm:$0xff] }
 0x1db   :  { %1640 = vmatprep.mubr.msk.f32.mxu0 %vm597_vm2, %v583_v7  ;;  %v1101_v7 = vld [vmem:[%s2228_s15] sm:$0xff] }
 0x296   :  { %v1628_v9 = vpop.f32.mrf.mxu0 }
 0x297   :  { %v566_v16 = vadd.f32 %v1628_v9, %v470_v14 }
 0x298   :  { %v560_v11 = vpop.f32.mrf.mxu0 }
 0x299   :  { %v561_v20 = vadd.f32 %v560_v11, %v465_v19  ;;  %v580_v22 = vmax.f32 %v566_v16, 0.0 }
 0x29a   :  { %v1631_v12 = vpop.f32.mrf.mxu0 }
 0x29b   :  { %v576_v13 = vadd.f32 %v1631_v12, %v480_v8  ;;  %v579_v23 = vmax.f32 %v561_v20, 0.0  ;;  %v957_v12 = vpop.permute.xlu1 %956 }
 0x29c   :  { %v570_v15 = vpop.f32.mrf.mxu0 }
 0x29d   :  { %v582_v17 = vmax.f32 %v576_v13, 0.0  ;;  %v571_v18 = vadd.f32 %v570_v15, %v475_v10  ;;  %v962_v10 = vpop.permute.xlu0 %961 }
 0x29f   :  { %v581_v21 = vmax.f32 %v571_v18, 0.0  ;;  %1632 = vmatprep.subr.mxu0 %v582_v17 }
 0x2a0   :  { %1633 = vmatpush3.msra.mxu0 %v582_v17  ;;  %v947_v17 = vpop.permute.xlu1 %946 }
 0x2a1   :  { %1634 = vmatprep.subr.mxu0 %v581_v21  ;;  %v952_v15 = vpop.permute.xlu0 %951 }
 0x2a2   :  { %1635 = vmatpush3.msra.mxu0 %v581_v21 }
 0x2a3   :  { %1636 = vmatprep.subr.mxu0 %v580_v22 }
 0x2a4   :  { %1637 = vmatpush3.msra.mxu0 %v580_v22 }
 0x2a5   :  { %1638 = vmatprep.subr.mxu0 %v579_v23 }
 0x2a6   :  { %1639 = vmatpush3.msra.mxu0 %v579_v23 }
 0x2a7   :  { %1641 = vmatmul.mubr.msk.f32.vlgmr.msra.gmra.mxu0 %vm597_vm2, %v584_v24  ;;  %v942_v24 = vpop.permute.xlu0 %941 }
 0x2a8   :  { %1654 = vmatprep.mubr.msk.f32.mxu0 %vm695_vm3, %v779_v35 }
 0x367   :  { %v1642_v27 = vpop.f32.mrf.mxu0 }
 0x368   :  { %v676_v28 = vadd.f32 %v1642_v27, %v595_v26  ;;  %v937_v27 = vpop.permute.xlu1 %936 }
 0x369   :  { %v670_v30 = vpop.f32.mrf.mxu0 }
 0x36a   :  { %v680_v31 = vmax.f32 %v676_v28, 0.0  ;;  %v671_v32 = vadd.f32 %v670_v30, %v590_v29 }
 0x36c   :  { %v679_v33 = vmax.f32 %v671_v32, 0.0  ;;  %1643 = vmatprep.subr.mxu1 %v680_v31  ;;  %v932_v32 = vpop.permute.xlu0 %931  ;;  %v927_v35 = vpop.permute.xlu1 %926 }
 0x36d   :  { %1644 = vmatpush3.msra.mxu1 %v680_v31 }
 0x36e   :  { %1645 = vmatprep.subr.mxu1 %v679_v33 }
 0x36f   :  { %1646 = vmatpush3.msra.mxu1 %v679_v33 }
 0x370   :  { %1648 = vmatmul.mubr.msk.f32.vlgmr.msra.gmra.mxu1 %vm695_vm3, %v682_v34 }
 0x371   :  { %1668 = vmatprep.mubr.msk.f32.mxu1 %vm597_vm2, %v908_v47  ;;  %v1764_v47 = vmov 0.0  }
 0x430   :  { %v1649_v37 = vpop.f32.mrf.mxu1 }
 0x431   :  { %v774_v38 = vadd.f32 %v1649_v37, %v693_v36 }
 0x432   :  { %v768_v40 = vpop.f32.mrf.mxu1 }
 0x433   :  { %v778_v41 = vmax.f32 %v774_v38, 0.0  ;;  %v769_v42 = vadd.f32 %v768_v40, %v688_v39  ;;  %v1102_v40 = vld [vmem:[%s2228_s15 + $0x8] sm:$0xff] }
 0x435   :  { %v777_v43 = vmax.f32 %v769_v42, 0.0  ;;  %1650 = vmatprep.subr.mxu0 %v778_v41  ;;  %v1104_v42 = vld [vmem:[%s2228_s15 + $0x18] sm:$0xff] }
 0x436   :  { %1651 = vmatpush3.msra.mxu0 %v778_v41  ;;  %v1103_v41 = vld [vmem:[%s2228_s15 + $0x10] sm:$0xff] }
 0x437   :  { %1652 = vmatprep.subr.mxu0 %v777_v43 }
 0x438   :  { %1653 = vmatpush3.msra.mxu0 %v777_v43  ;;  %v1105_v43 = vld [vmem:[%s2228_s15 + $0x20] sm:$0xff] }
 0x439   :  { %1655 = vmatmul.mubr.msk.f32.vlgmr.msra.gmra.mxu0 %vm695_vm3, %v780_v44  ;;  %v1106_v44 = vld [vmem:[%s2228_s15 + $0x28] sm:$0xff] }
 0x43a   :  { %1657 = vmatprep.mubr.msk.f32.mxu0 %vm695_vm3, %v781_v45  ;;  %v1107_v45 = vld [vmem:[%s2228_s15 + $0x30] sm:$0xff] }
 0x43d   :  { %1658 = vmatmul.mubr.msk.f32.gmra.mxu0 %vm695_vm3, %v782_v46  ;;  %v1108_v46 = vld [vmem:[%s2228_s15 + $0x38] sm:$0xff] }
 0x43e   :  { %1696 = vmatprep.mubr.msk.f32.mxu0 %vm316_vm1, %v1101_v7 }
 0x4f9   :  { %v1656_v49 = vpop.f32.mrf.mxu0 }
 0x4fa   :  { %v891_v56 = vadd.f32 %v1656_v49, %v795_v54 }
 0x4fb   :  { %v885_v51 = vpop.f32.mrf.mxu0 }
 0x4fc   :  { %v886_v60 = vadd.f32 %v885_v51, %v790_v59  ;;  %v905_v62 = vmax.f32 %v891_v56, 0.0 }
 0x4fd   :  { %v1659_v52 = vpop.f32.mrf.mxu0 }
 0x4fe   :  { %v901_v53 = vadd.f32 %v1659_v52, %v805_v48  ;;  %v904_v63 = vmax.f32 %v886_v60, 0.0  ;;  %v1150_v52 = vpop.permute.xlu1 %1149 }
 0x4ff   :  { %v895_v55 = vpop.f32.mrf.mxu0 }
 0x500   :  { %v907_v57 = vmax.f32 %v901_v53, 0.0  ;;  %v896_v58 = vadd.f32 %v895_v55, %v800_v50  ;;  %v1155_v50 = vpop.permute.xlu0 %1154 }
 0x502   :  { %v906_v61 = vmax.f32 %v896_v58, 0.0  ;;  %1660 = vmatprep.subr.mxu1 %v907_v57 }
 0x503   :  { %1661 = vmatpush3.msra.mxu1 %v907_v57  ;;  %v1140_v57 = vpop.permute.xlu1 %1139 }
 0x504   :  { %1662 = vmatprep.subr.mxu1 %v906_v61  ;;  %v1145_v55 = vpop.permute.xlu0 %1144 }
 0x505   :  { %1663 = vmatpush3.msra.mxu1 %v906_v61 }
 0x506   :  { %1664 = vmatprep.subr.mxu1 %v905_v62 }
 0x507   :  { %1665 = vmatpush3.msra.mxu1 %v905_v62 }
 0x508   :  { %1666 = vmatprep.subr.mxu1 %v904_v63 }
 0x509   :  { %1667 = vmatpush3.msra.mxu1 %v904_v63 }
 0x50a   :  { %1669 = vmatmul.mubr.msk.f32.vlgmr.msra.gmra.mxu1 %vm597_vm2, %v909_v0  ;;  %1708 = vmatprep.subr.mxu1 %v1764_v47  ;;  %v1135_v0 = vpop.permute.xlu0 %1134 }
 0x50b   :  { %1671 = vmatprep.mubr.msk.f32.mxu1 %vm597_vm2, %v910_v1 }
 0x50e   :  { %1672 = vmatmul.mubr.msk.f32.gmra.mxu1 %vm597_vm2, %v911_v2 }
 0x50f   :  { %1674 = vmatprep.mubr.msk.f32.mxu1 %vm597_vm2, %v912_v3  ;;  %v1130_v3 = vpop.permute.xlu1 %1129 }
 0x512   :  { %1675 = vmatmul.mubr.msk.f32.gmra.mxu1 %vm597_vm2, %v913_v4 }
 0x513   :  { %1677 = vmatprep.mubr.msk.f32.mxu1 %vm597_vm2, %v914_v5 }
 0x516   :  { %1678 = vmatmul.mubr.msk.f32.gmra.mxu1 %vm597_vm2, %v915_v6 }
 0x517   :  { %1724 = vmatprep.mubr.msk.f32.mxu1 %vm1765_vm4, %v1764_v47 }
 0x5ca   :  { %v1670_v8 = vpop.f32.mrf.mxu1 }
 0x5cb   :  { %v1060_v33 = vadd.f32 %v1670_v8, %v932_v32  ;;  %v1125_v8 = vpop.permute.xlu0 %1124 }
 0x5cc   :  { %v1054_v9 = vpop.f32.mrf.mxu1 }
 0x5cd   :  { %v1055_v36 = vadd.f32 %v1054_v9, %v927_v35  ;;  %v1094_v38 = vmax.f32 %v1060_v33, 0.0 }
 0x5ce   :  { %v1673_v11 = vpop.f32.mrf.mxu1 }
 0x5cf   :  { %v1070_v28 = vadd.f32 %v1673_v11, %v942_v24  ;;  %v1093_v39 = vmax.f32 %v1055_v36, 0.0  ;;  %v1120_v11 = vpop.permute.xlu1 %1119 }
 0x5d0   :  { %v1064_v13 = vpop.f32.mrf.mxu1 }
 0x5d1   :  { %v1065_v30 = vadd.f32 %v1064_v13, %v937_v27  ;;  %v1096_v34 = vmax.f32 %v1070_v28, 0.0 }
 0x5d2   :  { %v1676_v14 = vpop.f32.mrf.mxu1 }
 0x5d3   :  { %v1080_v21 = vadd.f32 %v1676_v14, %v952_v15  ;;  %v1095_v37 = vmax.f32 %v1065_v30, 0.0 }
 0x5d4   :  { %v1074_v16 = vpop.f32.mrf.mxu1 }
 0x5d5   :  { %v1075_v25 = vadd.f32 %v1074_v16, %v947_v17  ;;  %v1098_v29 = vmax.f32 %v1080_v21, 0.0  ;;  %v1294_v16 = vld [vmem:[%s2230_s17] sm:$0xff]  ;;  %v1295_v17 = vld [vmem:[%s2230_s17 + $0x8] sm:$0xff] }
 0x5d6   :  { %v1679_v18 = vpop.f32.mrf.mxu1 }
 0x5d7   :  { %v1090_v19 = vadd.f32 %v1679_v18, %v962_v10  ;;  %v1097_v31 = vmax.f32 %v1075_v25, 0.0  ;;  %v1296_v18 = vld [vmem:[%s2230_s17 + $0x10] sm:$0xff]  ;;  %s1741_s17 = scalar_lea.vmem %s1413_s13, 384 }
 0x5d8   :  { %v1084_v20 = vpop.f32.mrf.mxu1  ;;  %p1742_p0 = scmp.ne.s32.totalorder %s1413_s13, %s1741_s17  ;;  %p1747_p2 = scmp.lt.s32.totalorder %s1741_s17, %s1741_s17 }
 0x5d9   :  { %v1100_v22 = vmax.f32 %v1090_v19, 0.0  ;;  %v1085_v23 = vadd.f32 %v1084_v20, %v957_v12  ;;  %v1303_v19 = vpop.permute.xlu0 %1302 }
 0x5da   :  { %p1748_p3 = por %p1747_p2, %p1746_p1 }
 0x5db   :  { %v1099_v26 = vmax.f32 %v1085_v23, 0.0  ;;  %1680 = vmatprep.subr.mxu0 %v1100_v22  ;;  %v1308_v23 = vpop.permute.xlu1 %1307 }
 0x5dc   :  { %1681 = vmatpush3.msra.mxu0 %v1100_v22  ;;  %p1749_p4 = pnand %p1748_p3, %p1742_p0 }
 0x5dd   :  { %1682 = vmatprep.subr.mxu0 %v1099_v26  ;;  %v1313_v27 = vpop.permute.xlu0 %1312 }
 0x5de   :  { %1683 = vmatpush3.msra.mxu0 %v1099_v26 }
 0x5df   :  { %1684 = vmatprep.subr.mxu0 %v1098_v29 }
 0x5e0   :  { %1685 = vmatpush3.msra.mxu0 %v1098_v29 }
 0x5e1   :  { %1686 = vmatprep.subr.mxu0 %v1097_v31 }
 0x5e2   :  { %1687 = vmatpush3.msra.mxu0 %v1097_v31 }
 0x5e3   :  { %1688 = vmatprep.subr.mxu0 %v1096_v34 }
 0x5e4   :  { %1689 = vmatpush3.msra.mxu0 %v1096_v34 }
 0x5e5   :  { %1690 = vmatprep.subr.mxu0 %v1095_v37 }
 0x5e6   :  { %1691 = vmatpush3.msra.mxu0 %v1095_v37 }
 0x5e7   :  { %1692 = vmatprep.subr.mxu0 %v1094_v38 }
 0x5e8   :  { %1693 = vmatpush3.msra.mxu0 %v1094_v38 }
 0x5e9   :  { %1694 = vmatprep.subr.mxu0 %v1093_v39 }
 0x5ea   :  { %1695 = vmatpush3.msra.mxu0 %v1093_v39 }
 0x5eb   :  { %1697 = vmatmul.mubr.msk.f32.vlgmr.msra.gmra.mxu0 %vm316_vm1, %v1102_v40 }
 0x5ec   :  { %1699 = vmatprep.mubr.msk.f32.mxu0 %vm316_vm1, %v1103_v41 }
 0x5ef   :  { %1700 = vmatmul.mubr.msk.f32.gmra.mxu0 %vm316_vm1, %v1104_v42 }
 0x5f0   :  { %1702 = vmatprep.mubr.msk.f32.mxu0 %vm316_vm1, %v1105_v43 }
 0x5f3   :  { %1703 = vmatmul.mubr.msk.f32.gmra.mxu0 %vm316_vm1, %v1106_v44 }
 0x5f4   :  { %1705 = vmatprep.mubr.msk.f32.mxu0 %vm316_vm1, %v1107_v45 }
 0x5f7   :  { %1706 = vmatmul.mubr.msk.f32.gmra.mxu0 %vm316_vm1, %v1108_v46 }
 0x6ab   :  { %v1698_v48 = vpop.f32.mrf.mxu0 }
 0x6ac   :  { %v1253_v9 = vadd.f32 %v1698_v48, %v1125_v8 }
 0x6ad   :  { %v1247_v49 = vpop.f32.mrf.mxu0 }
 0x6ae   :  { %v1248_v12 = vadd.f32 %v1247_v49, %v1120_v11  ;;  %v1287_v14 = vmax.f32 %v1253_v9, 0.0 }
 0x6af   :  { %v1701_v51 = vpop.f32.mrf.mxu0 }
 0x6b0   :  { %v1263_v4 = vadd.f32 %v1701_v51, %v1135_v0  ;;  %v1286_v15 = vmax.f32 %v1248_v12, 0.0 }
 0x6b1   :  { %v1257_v53 = vpop.f32.mrf.mxu0 }
 0x6b2   :  { %v1258_v6 = vadd.f32 %v1257_v53, %v1130_v3  ;;  %v1289_v10 = vmax.f32 %v1263_v4, 0.0 }
 0x6b3   :  { %v1704_v54 = vpop.f32.mrf.mxu0 }
 0x6b4   :  { %v1273_v61 = vadd.f32 %v1704_v54, %v1145_v55  ;;  %v1288_v13 = vmax.f32 %v1258_v6, 0.0 }
 0x6b5   :  { %v1267_v56 = vpop.f32.mrf.mxu0 }
 0x6b6   :  { %v1268_v1 = vadd.f32 %v1267_v56, %v1140_v57  ;;  %v1291_v5 = vmax.f32 %v1273_v61, 0.0 }
 0x6b7   :  { %v1707_v58 = vpop.f32.mrf.mxu0 }
 0x6b8   :  { %v1283_v59 = vadd.f32 %v1707_v58, %v1155_v50  ;;  %v1290_v7 = vmax.f32 %v1268_v1, 0.0 }
 0x6b9   :  { %v1277_v60 = vpop.f32.mrf.mxu0 }
 0x6ba   :  { %v1293_v62 = vmax.f32 %v1283_v59, 0.0  ;;  %v1278_v63 = vadd.f32 %v1277_v60, %v1150_v52 }
 0x6bc   :  { %v1292_v2 = vmax.f32 %v1278_v63, 0.0  ;;  %1709 = vmatpush3.msra.mxu1 %v1293_v62 }
 0x6bd   :  { %1710 = vmatprep.subr.mxu1 %v1764_v47 }
 0x6be   :  { %1711 = vmatpush3.msra.mxu1 %v1292_v2 }
 0x6bf   :  { %1712 = vmatprep.subr.mxu1 %v1764_v47 }
 0x6c0   :  { %1713 = vmatpush3.msra.mxu1 %v1291_v5 }
 0x6c1   :  { %1714 = vmatprep.subr.mxu1 %v1764_v47 }
 0x6c2   :  { %1715 = vmatpush3.msra.mxu1 %v1290_v7 }
 0x6c3   :  { %1716 = vmatprep.subr.mxu1 %v1764_v47 }
 0x6c4   :  { %1717 = vmatpush3.msra.mxu1 %v1289_v10 }
 0x6c5   :  { %1718 = vmatprep.subr.mxu1 %v1764_v47 }
 0x6c6   :  { %1719 = vmatpush3.msra.mxu1 %v1288_v13 }
 0x6c7   :  { %1720 = vmatprep.subr.mxu1 %v1764_v47 }
 0x6c8   :  { %1721 = vmatpush3.msra.mxu1 %v1287_v14 }
 0x6c9   :  { %1722 = vmatprep.subr.mxu1 %v1764_v47 }
 0x6ca   :  { %1723 = vmatpush3.msra.mxu1 %v1286_v15 }
 0x6cb   :  { %1725 = vmatmul.mubr.msk.f32.vlgmr.msra.gmra.mxu1 %vm316_vm1, %v1294_v16 }
 0x6cc   :  { %1727 = vmatprep.mubr.msk.f32.mxu1 %vm1765_vm4, %v1764_v47 }
 0x6cf   :  { %1728 = vmatmul.mubr.msk.f32.gmra.mxu1 %vm316_vm1, %v1295_v17 }
 0x6d0   :  { %1730 = vmatprep.mubr.msk.f32.mxu1 %vm1765_vm4, %v1764_v47 }
 0x6d3   :  { %1731 = vmatmul.mubr.msk.f32.gmra.mxu1 %vm316_vm1, %v1296_v18 }
 0x78b   :  { %v1390_v20 = vpop.f32.mrf.mxu1 }
 0x78c   :  { %v1391_v21 = vadd.f32 %v1390_v20, %v1303_v19 }
 0x78d   :  { %v1726_v22 = vpop.f32.mrf.mxu1 }
 0x78e   :  { %1404 = vst [vmem:[#allocation2] sm:$0xff] %v1391_v21 }
 0x78f   :  { %v1395_v24 = vpop.f32.mrf.mxu1 }
 0x790   :  { %v1396_v25 = vadd.f32 %v1395_v24, %v1308_v23 }
 0x791   :  { %v1729_v26 = vpop.f32.mrf.mxu1 }
 0x792   :  { %1405 = vst [vmem:[#allocation2 + $0x8] sm:$0xff] %v1396_v25 }
 0x793   :  { %v1400_v28 = vpop.f32.mrf.mxu1 }
 0x794   :  { %v1401_v29 = vadd.f32 %v1400_v28, %v1313_v27 }
 0x795   :  { %v1732_v30 = vpop.f32.mrf.mxu1 }
 0x796   :  { %1406 = vst [vmem:[#allocation2 + $0x10] sm:$0xff] %v1401_v29 }
 0x797   :  { %1752 = shalt.err (!%p1749_p4)
}
 0x798   :  { %s1767_s8 = smov 128   ;;  %s1768_s16 = smov 8  }
 0x799   :  { %1418 = dma.vmem_to_hbm [thread:$0]  %s1413_s13, 384, %s2232_s19, [#allocation3], %s1767_s8, %s1767_s8, %s1768_s16  }
 0x79a   :  { %1761 = dma.done.wait [#allocation3], 384  }
 0x79b   :  { %1762 = vsyncadd [#allocation3], 4294966912 }
 0x79c   :  { %1422 = vsyncpa [#allocation3], 1 }

</bundles_post_ra>
